<compile_context>
chip_gen: v7x
topology: tpu7x:2x2x1
jax: 0.10.0
libtpu: 0.0.40
codegen_flags: <defaults>
</compile_context>

<pallas_src>
import numpy as np
import jax
import jax.numpy as jnp
from jax.experimental import pallas as pl
from jax.experimental.pallas import tpu as pltpu


# ----------------------------------------------------------------------------
# Kernels
# ----------------------------------------------------------------------------

def _bayer_split_kernel(even_ref, odd_ref, o_ref):
    """Parity-selective path (requires W % 128 == 0).

    even_ref : (BN, 2, TH2, W)  channels {0,1} restricted to even image rows
    odd_ref  : (BN, 2, TH2, W)  channels {2,3} restricted to odd  image rows
    o_ref    : (BN, TH2, 2*W)   row-pair output; [.., :W] = even row, [.., W:] = odd row
    """
    _, _, th2, w = even_ref.shape
    col_even = (jax.lax.broadcasted_iota(jnp.int32, (th2, w), 1) % 2) == 0
    # Even image rows: ch0 on even columns, ch1 on odd columns.
    o_ref[:, :, :w] = jnp.where(col_even, even_ref[:, 0], even_ref[:, 1])
    # Odd image rows: ch2 on even columns, ch3 on odd columns.
    o_ref[:, :, w:] = jnp.where(col_even, odd_ref[:, 0], odd_ref[:, 1])


def _bayer_naive_kernel(x_ref, o_ref):
    """Fallback path (narrow / non-128-multiple W): fetch all 4 channels.

    x_ref : (BN, 4, TH, W)   TH even, tile row offsets even -> local parity == global
    o_ref : (BN, TH, W)      output channel dim squeezed away
    """
    _, _, th, w = x_ref.shape
    row_even = (jax.lax.broadcasted_iota(jnp.int32, (th, w), 0) % 2) == 0
    col_even = (jax.lax.broadcasted_iota(jnp.int32, (th, w), 1) % 2) == 0
    top = jnp.where(col_even, x_ref[:, 0], x_ref[:, 1])   # even rows: ch0 / ch1
    bot = jnp.where(col_even, x_ref[:, 2], x_ref[:, 3])   # odd rows : ch2 / ch3
    o_ref[...] = jnp.where(row_even, top, bot)


# ----------------------------------------------------------------------------
# Tiling heuristics
# ----------------------------------------------------------------------------

def _sublane_multiple(dtype):
    """Minimum second-minor tile per dtype (f32: 8, bf16/f16: 16, int8/fp8: 32)."""
    return {4: 8, 2: 16, 1: 32}[jnp.dtype(dtype).itemsize]


def _divisors(n):
    return [d for d in range(1, n + 1) if n % d == 0]


def _pick_tiles(n_batch, n_rows, per_row_bytes, sub, target_block_bytes, min_steps):
    """Pick (batch_block BN, row_tile TR) for a (batch, row) grid.

    Row-tile candidates are multiples of `sub` dividing n_rows (plus n_rows
    itself, always legal as a full dim).  Per-step live block bytes stay
    <= target_block_bytes when possible, and the total grid-step count is kept
    >= min_steps (else >= 2, else 1) so DMA pipelining and megacore sharding
    are not lost.
    """
    cands = sorted({d for d in _divisors(n_rows) if d % sub == 0} | {n_rows})
    fits = [t for t in cands if t * per_row_bytes <= target_block_bytes]
    if not fits:
        fits = [cands[0]]  # smallest legal tile; may exceed target for huge W
    row_tile = fits[-1]
    for want in (min_steps, 2, 1):
        good = [t for t in fits if n_batch * (n_rows // t) >= want]
        if good:
            row_tile = max(good)
            break
    base_steps = n_batch * (n_rows // row_tile)
    floor = min(min_steps, base_steps)
    bn = 1
    for d in _divisors(n_batch):
        ok_bytes = d * row_tile * per_row_bytes <= target_block_bytes
        ok_steps = (n_batch // d) * (n_rows // row_tile) >= floor
        if ok_bytes and ok_steps:
            bn = d
    return bn, row_tile


def _compiler_params(block_bytes):
    kwargs = dict(dimension_semantics=("parallel", "parallel"))
    needed = 2 * block_bytes + (2 << 20)  # double-buffered pipeline + headroom
    if needed > (14 << 20):  # might not fit v5e's 16 MiB default scoped VMEM
        kwargs["vmem_limit_bytes"] = int(needed)
    return pltpu.CompilerParams(**kwargs)


# ----------------------------------------------------------------------------
# Wrappers
# ----------------------------------------------------------------------------

def bayerize(x, *, target_block_bytes=2 << 20, vmem_budget_bytes=12 << 20,
             min_grid_steps=8):
    """x: (N, 4, H, W) -> (N, 1, H, W) bayer mosaic."""
    N, C, H, W = x.shape
    assert C == 4, "expected 4 input channels"
    assert H % 2 == 0 and W % 2 == 0, "H and W must be even"

    bpe = jnp.dtype(x.dtype).itemsize
    sub = _sublane_multiple(x.dtype)
    # Double-buffered footprint is 2x the live block; keep headroom in budget.
    target = min(int(target_block_bytes),
                 max(64 * 1024, vmem_budget_bytes // 2 - (1 << 20)))

    use_split = (W % 128 == 0) and (W * bpe >= 512)
    if use_split:
        return _bayerize_split(x, N, H, W, bpe, sub, target, min_grid_steps)
    return _bayerize_naive(x, N, H, W, bpe, sub, target, min_grid_steps)


def _bayerize_split(x, N, H, W, bpe, sub, target, min_steps):
    H2 = H // 2
    # Free reshape: row-pair r of channel c = [row 2r | row 2r+1], 2W wide.
    x5 = x.reshape(N, 4, H2, 2 * W)
    per_row_bytes = 6 * W * bpe          # 4 fetched rows + 2 written rows / pair
    BN, TH2 = _pick_tiles(N, H2, per_row_bytes, sub, target, min_steps)
    grid = (N // BN, H2 // TH2)
    out = pl.pallas_call(
        _bayer_split_kernel,
        out_shape=jax.ShapeDtypeStruct((N, H2, 2 * W), x.dtype),
        grid=grid,
        in_specs=[
            # channels {0,1}, even rows (first W of each row-pair)
            pl.BlockSpec((BN, 2, TH2, W), lambda n, h: (n, 0, h, 0)),
            # channels {2,3}, odd rows (last W of each row-pair)
            pl.BlockSpec((BN, 2, TH2, W), lambda n, h: (n, 1, h, 1)),
        ],
        out_specs=pl.BlockSpec((BN, TH2, 2 * W), lambda n, h: (n, h, 0)),
        compiler_params=_compiler_params(BN * TH2 * per_row_bytes),
    )(x5, x5)
    return out.reshape(N, 1, H, W)


def _bayerize_naive(x, N, H, W, bpe, sub, target, min_steps):
    per_row_bytes = 5 * W * bpe          # 4 input channels + 1 output per row
    BN, TH = _pick_tiles(N, H, per_row_bytes, sub, target, min_steps)
    grid = (N // BN, H // TH)
    return pl.pallas_call(
        _bayer_naive_kernel,
        out_shape=jax.ShapeDtypeStruct((N, 1, H, W), x.dtype),
        grid=grid,
        in_specs=[pl.BlockSpec((BN, 4, TH, W), lambda n, h: (n, 0, h, 0))],
        out_specs=pl.BlockSpec((BN, pl.Squeezed(), TH, W),
                               lambda n, h: (n, 0, h, 0)),
        compiler_params=_compiler_params(BN * TH * per_row_bytes),
    )(x)


# ----------------------------------------------------------------------------
# Pure-JAX reference (grouped conv2d stride 2 + PixelShuffle(2))
# ----------------------------------------------------------------------------

def bayer_weight():
    w = np.zeros((4, 1, 2, 2), np.float32)
    w[0, 0, 0, 0] = 1.0  # filt_1
    w[1, 0, 0, 1] = 1.0  # filt_2
    w[2, 0, 1, 0] = 1.0  # filt_3
    w[3, 0, 1, 1] = 1.0  # filt_4
    return jnp.asarray(w)


def ref_forward(x):
    w = bayer_weight().astype(x.dtype)
    gbrg = jax.lax.conv_general_dilated(
        x, w, window_strides=(2, 2), padding="VALID",
        dimension_numbers=("NCHW", "OIHW", "NCHW"),
        feature_group_count=4,
    )  # (N, 4, H/2, W/2)
    n, _, hh, ww = gbrg.shape
    out = gbrg.reshape(n, 1, 2, 2, hh, ww).transpose(0, 1, 4, 2, 5, 3)
    return out.reshape(n, 1, hh * 2, ww * 2)


def _check(out, x):
    got = np.asarray(out, dtype=np.float32)
    exp = np.asarray(ref_forward(x), dtype=np.float32)
    np.testing.assert_array_equal(got, exp)


if __name__ == "__main__":
    key = jax.random.PRNGKey(0)

    # 1) Module-shaped small input (narrow W) -> full-fetch fallback, grid (2, 1).
    x = jax.random.normal(key, (2, 4, 16, 16), dtype=jnp.float32)
    _check(jax.block_until_ready(bayerize(x)), x)

    # 2) Parity-selective path (W multiple of 128), whole plane per block.
    x2 = jax.random.normal(key, (2, 4, 32, 256), dtype=jnp.float32)
    _check(jax.block_until_ready(bayerize(x2)), x2)

    # 3) Parity-selective path with forced row tiling (grid (2, 4)); verifies
    #    non-zero row-pair tile offsets and the channel/parity block pairing.
    x3 = jax.random.normal(key, (2, 4, 64, 256), dtype=jnp.float32)
    _check(jax.block_until_ready(bayerize(x3, target_block_bytes=48 * 1024)), x3)

    # 4) bf16 parity-selective path (dtype-aware sublane multiple = 16).
    x4 = jax.random.normal(key, (2, 4, 64, 256), dtype=jnp.bfloat16)
    _check(jax.block_until_ready(bayerize(x4)), x4)

    # 5) Fallback path with forced row tiling (grid (2, 8)); verifies tile-local
    #    row parity equals global parity.
    x5 = jax.random.normal(key, (2, 4, 64, 96), dtype=jnp.float32)
    _check(jax.block_until_ready(bayerize(x5, target_block_bytes=16 * 1024)), x5)

    print("KERNEL_OK")
</pallas_src>

<mosaic_0001>
module attributes {stable_mosaic.version = 11 : i64} {
  func.func @_bayer_naive_kernel(%arg0: i32, %arg1: i32, %arg2: memref<1x4x16x16xf32, #tpu.memory_space<vmem>>, %arg3: memref<1x1x16x16xf32, #tpu.memory_space<vmem>>) attributes {dimension_semantics = [#tpu.dimension_semantics<parallel>, #tpu.dimension_semantics<parallel>], iteration_bounds = array<i64: 2, 1>, scalar_prefetch = 0 : i64, scratch_operands = 0 : i64, tpu.core_type = #tpu.core_type<tc>, window_params = [{transform_indices = @transform_0, window_bounds = array<i64: 1, 4, 16, 16>}, {transform_indices = @transform_1, window_bounds = array<i64: 1, 1, 16, 16>}]} {
    %0 = tpu.iota {dimensions = array<i32: 0>} : vector<16x16xi32>
    %c2_i32 = arith.constant 2 : i32
    %c0_i32 = arith.constant 0 : i32
    %1 = arith.cmpi eq, %c2_i32, %c0_i32 : i32
    %c1_i32 = arith.constant 1 : i32
    %2 = arith.select %1, %c1_i32, %c2_i32 : i32
    %3 = vector.broadcast %2 : i32 to vector<16x16xi32>
    %4 = arith.remsi %0, %3 : vector<16x16xi32>
    %c0_i32_0 = arith.constant 0 : i32
    %5 = vector.broadcast %c0_i32_0 : i32 to vector<16x16xi32>
    %6 = arith.cmpi ne, %4, %5 : vector<16x16xi32>
    %c0_i32_1 = arith.constant 0 : i32
    %7 = vector.broadcast %c0_i32_1 : i32 to vector<16x16xi32>
    %8 = arith.cmpi slt, %4, %7 : vector<16x16xi32>
    %c0_i32_2 = arith.constant 0 : i32
    %9 = arith.cmpi slt, %2, %c0_i32_2 : i32
    %10 = vector.broadcast %9 : i1 to vector<16x16xi1>
    %11 = vector.broadcast %10 : vector<16x16xi1> to vector<16x16xi1>
    %12 = arith.xori %8, %11 : vector<16x16xi1>
    %13 = arith.andi %12, %6 : vector<16x16xi1>
    %14 = vector.broadcast %2 : i32 to vector<16x16xi32>
    %15 = arith.addi %4, %14 : vector<16x16xi32>
    %16 = arith.select %13, %15, %4 : vector<16x16xi1>, vector<16x16xi32>
    %c0_i32_3 = arith.constant 0 : i32
    %17 = vector.broadcast %c0_i32_3 : i32 to vector<16x16xi32>
    %18 = arith.cmpi eq, %16, %17 : vector<16x16xi32>
    %19 = tpu.iota {dimensions = array<i32: 1>} : vector<16x16xi32>
    %c2_i32_4 = arith.constant 2 : i32
    %c0_i32_5 = arith.constant 0 : i32
    %20 = arith.cmpi eq, %c2_i32_4, %c0_i32_5 : i32
    %c1_i32_6 = arith.constant 1 : i32
    %21 = arith.select %20, %c1_i32_6, %c2_i32_4 : i32
    %22 = vector.broadcast %21 : i32 to vector<16x16xi32>
    %23 = arith.remsi %19, %22 : vector<16x16xi32>
    %c0_i32_7 = arith.constant 0 : i32
    %24 = vector.broadcast %c0_i32_7 : i32 to vector<16x16xi32>
    %25 = arith.cmpi ne, %23, %24 : vector<16x16xi32>
    %c0_i32_8 = arith.constant 0 : i32
    %26 = vector.broadcast %c0_i32_8 : i32 to vector<16x16xi32>
    %27 = arith.cmpi slt, %23, %26 : vector<16x16xi32>
    %c0_i32_9 = arith.constant 0 : i32
    %28 = arith.cmpi slt, %21, %c0_i32_9 : i32
    %29 = vector.broadcast %28 : i1 to vector<16x16xi1>
    %30 = vector.broadcast %29 : vector<16x16xi1> to vector<16x16xi1>
    %31 = arith.xori %27, %30 : vector<16x16xi1>
    %32 = arith.andi %31, %25 : vector<16x16xi1>
    %33 = vector.broadcast %21 : i32 to vector<16x16xi32>
    %34 = arith.addi %23, %33 : vector<16x16xi32>
    %35 = arith.select %32, %34, %23 : vector<16x16xi1>, vector<16x16xi32>
    %c0_i32_10 = arith.constant 0 : i32
    %36 = vector.broadcast %c0_i32_10 : i32 to vector<16x16xi32>
    %37 = arith.cmpi eq, %35, %36 : vector<16x16xi32>
    %c0 = arith.constant 0 : index
    %c0_11 = arith.constant 0 : index
    %c0_12 = arith.constant 0 : index
    %c0_13 = arith.constant 0 : index
    %38 = vector.load %arg2[%c0, %c0_11, %c0_12, %c0_13] : memref<1x4x16x16xf32, #tpu.memory_space<vmem>>, vector<1x1x16x16xf32>
    %39 = vector.shape_cast %38 : vector<1x1x16x16xf32> to vector<1x16x16xf32>
    %c0_14 = arith.constant 0 : index
    %c1 = arith.constant 1 : index
    %c0_15 = arith.constant 0 : index
    %c0_16 = arith.constant 0 : index
    %40 = vector.load %arg2[%c0_14, %c1, %c0_15, %c0_16] : memref<1x4x16x16xf32, #tpu.memory_space<vmem>>, vector<1x1x16x16xf32>
    %41 = vector.shape_cast %40 : vector<1x1x16x16xf32> to vector<1x16x16xf32>
    %42 = vector.shape_cast %37 : vector<16x16xi1> to vector<1x16x16xi1>
    %43 = arith.select %42, %39, %41 : vector<1x16x16xi1>, vector<1x16x16xf32>
    %c0_17 = arith.constant 0 : index
    %c2 = arith.constant 2 : index
    %c0_18 = arith.constant 0 : index
    %c0_19 = arith.constant 0 : index
    %44 = vector.load %arg2[%c0_17, %c2, %c0_18, %c0_19] : memref<1x4x16x16xf32, #tpu.memory_space<vmem>>, vector<1x1x16x16xf32>
    %45 = vector.shape_cast %44 : vector<1x1x16x16xf32> to vector<1x16x16xf32>
    %c0_20 = arith.constant 0 : index
    %c3 = arith.constant 3 : index
    %c0_21 = arith.constant 0 : index
    %c0_22 = arith.constant 0 : index
    %46 = vector.load %arg2[%c0_20, %c3, %c0_21, %c0_22] : memref<1x4x16x16xf32, #tpu.memory_space<vmem>>, vector<1x1x16x16xf32>
    %47 = vector.shape_cast %46 : vector<1x1x16x16xf32> to vector<1x16x16xf32>
    %48 = vector.shape_cast %37 : vector<16x16xi1> to vector<1x16x16xi1>
    %49 = arith.select %48, %45, %47 : vector<1x16x16xi1>, vector<1x16x16xf32>
    %50 = vector.shape_cast %18 : vector<16x16xi1> to vector<1x16x16xi1>
    %51 = arith.select %50, %43, %49 : vector<1x16x16xi1>, vector<1x16x16xf32>
    %c0_23 = arith.constant 0 : index
    %c0_24 = arith.constant 0 : index
    %c0_25 = arith.constant 0 : index
    %c0_26 = arith.constant 0 : index
    %52 = vector.load %arg3[%c0_23, %c0_24, %c0_25, %c0_26] : memref<1x1x16x16xf32, #tpu.memory_space<vmem>>, vector<1x1x16x16xf32>
    %53 = vector.shape_cast %52 : vector<1x1x16x16xf32> to vector<1x16x16xf32>
    %54 = vector.shape_cast %51 : vector<1x16x16xf32> to vector<1x1x16x16xf32>
    tpu.vector_store %arg3[%c0_23, %c0_24, %c0_25, %c0_26], %54 {strides = array<i32>} : memref<1x1x16x16xf32, #tpu.memory_space<vmem>>, vector<1x1x16x16xf32>,
    return
  }
  func.func @transform_0(%arg0: i32, %arg1: i32) -> (i32, i32, i32, i32) {
    %c0_i32 = arith.constant 0 : i32
    %c0_i32_0 = arith.constant 0 : i32
    %c0_i32_1 = arith.constant 0 : i32
    return %arg0, %c0_i32, %arg1, %c0_i32_0 : i32, i32, i32, i32
  }
  func.func @transform_1(%arg0: i32, %arg1: i32) -> (i32, i32, i32, i32) {
    %c0_i32 = arith.constant 0 : i32
    %c0_i32_0 = arith.constant 0 : i32
    %c0_i32_1 = arith.constant 0 : i32
    return %arg0, %c0_i32, %arg1, %c0_i32_0 : i32, i32, i32, i32
  }
}

</mosaic_0001>

<bundles_post_ra>
// kernel: tpu_custom_call.1
= control target key start
LH: loop header
LB: loop body
LE: loop exit
PB: predicated region body
PF: predicated region fallthrough
CT: control target
= control target key end

     0   :  { %6 = vsyncpa [#allocation3], 0  ;;  %s735_s0 = inlined_call_operand.hbm [shape: f32[2,4,16,16], index: 0, kind: input, shape index: {}]   ;;  %s736_s1 = inlined_call_operand.hbm [shape: f32[2,1,16,16], index: 1, kind: output, shape index: {}]  }
   0x1   :  { %8 = vsyncpa [#allocation3 + $0x1], 0 }
   0x2   :  { %9 = vsyncpa [#allocation4], 0 }
   0x3   :  { %11 = vsyncpa [#allocation4 + $0x1], 0  ;;  %s541_s6 = smov 0   ;;  %s543_s7 = smov 0  }
   0x4   :  { %s545_s8 = smov 0   ;;  %s547_s9 = smov 0  }
   0x5   :  { %s549_s10 = smov 0   ;;  %s551_s11 = smov 0  }
   0x6 LB: > { %s322_s12 = sadd.s32 4294967295, %s523_s11   ;;  %s323_s13 = sadd.s32 4294967294, %s523_s11   ;;  %s523_s11 = sphi %s551_s11, %s17_s11   ;;  %s519_s10 = sphi %s549_s10, %s755_s10   ;;  %s515_s9 = sphi %s547_s9, %s754_s9   ;;  %s511_s8 = sphi %s545_s8, %s753_s8   ;;  %s507_s7 = sphi %s543_s7, %s752_s7   ;;  %s503_s6 = sphi %s541_s6, %s751_s6  }
   0x7   : > { %s29_s14 = sadd.s32 1, %s519_s10  ;;  %s38_s15 = sadd.s32 1, %s511_s8 }
   0x8   : > { %p31_p0 = scmp.ge.s32.totalorder %s29_s14, 2  ;;  %p45_p1 = scmp.ne.s32.totalorder %s511_s8, %s507_s7 }
   0x9   : > { %p46_p2 = scmp.eq.s32.totalorder %s523_s11, 0  ;;  %p51_p3 = scmp.ne.s32.totalorder %s507_s7, %s503_s6 }
   0xa   : > { %s757_s14 = smov (%p31_p0, %s29_s14), 0  ;;  %p52_p5 = scmp.eq.s32.totalorder %s322_s12, 0 }
   0xb   : > { %p582_p4 = por %p46_p2, %p45_p1  ;;  %s33_s17 = ssub.s32 %s519_s10, %s757_s14 }
   0xc   : > { %p77_p6 = scmp.eq.s32.totalorder %s322_s12, 1  ;;  %p36_p7 = scmp.eq.s32.totalorder %s33_s17, 0 }
   0xd   : > { %p588_p8 = por %p52_p5, %p51_p3  ;;  %p83_p10 = scmp.eq.s32.totalorder %s323_s13, 1 }
   0xe   : > { %p592_p9 = por %p77_p6, %p45_p1  ;;  %p357_p13 = scmp.lt.s32.totalorder %s523_s11, 2 }
   0xf   : > { %s597_s20 = scalar_select %p36_p7, %s511_s8, %s38_s15  }
  0x10   : > { %s740_s19 = scalar_select %p592_p9, 1, 0 }
  0x11   : > { %p599_p11 = por %p83_p10, %p51_p3  ;;  %s103_s22 = sand.u32 1, %s511_s8  }
  0x12   : > { %s326_s23 = sshll.u32 %s103_s22, 6  ;;  %s343_s24 = sshll.u32 %s519_s10, 10 }
  0x13   : > { %s741_s21 = scalar_select %p599_p11, 1, 0 }
  0x14   : > { %s610_s27 = scalar_lea.hbm %s735_s0, %s343_s24  ;;  %s107_s28 = scalar_lea.vmem [#allocation2], %s326_s23 }
  0x15   : > { %s116_s29 = sshll.u32 %s107_s28, 4  ;;  %p616_p0 = pnand %p357_p13, %p582_p4  ;;  %s612_s29 = int_to_ptr.vmem [resolvable:$true] %s116_s29 }
  0x16   : > { %s621_s2 = scalar_lea.sflag [#allocation3], %s103_s22  ;;  %s411_s3 = scalar_lea.hbm %s610_s27, 1024 }
  0x17   : > { %p412_p2 = scmp.ne.s32.totalorder %s610_s27, %s411_s3  ;;  %p413_p3 = pneg %p616_p0 }
  0x18   : > { %s416_s12 = scalar_lea.hbm %s735_s0, 2048  ;;  %p417_p4 = scmp.lt.u32.totalorder %s610_s27, %s735_s0 }
  0x19   : > { %p414_p5 = pnand %p413_p3, %p412_p2  ;;  %p418_p7 = scmp.lt.u32.totalorder %s416_s12, %s411_s3 }
  0x1a   : > { %p420_p13 = scmp.lt.u32.totalorder %s411_s3, %s610_s27 }
  0x1b   : > { %p415_p6 = pneg %p414_p5  ;;  %p419_p10 = por %p418_p7, %p417_p4 }
  0x1d   : > { %p421_p12 = por %p420_p13, %p419_p10 }
  0x1f   : > { %p422_p1 = pnand %p421_p12, %p415_p6 }
  0x21   : > { %425 = shalt.err (!%p422_p1)
}
  0x22   : > { %s426_s16 = scalar_lea.vmem %s612_s29, 1024  ;;  %s525_s17 = smov [#allocation2]  }
  0x23   : > { %p427_p2 = scmp.ne.s32.totalorder %s612_s29, %s426_s16  ;;  %s431_s22 = sshll.u32 %s525_s17, 4  ;;  %s432_s22 = int_to_ptr.vmem [resolvable:$false] %s431_s22 }
  0x24   : > { %s433_s23 = scalar_lea.vmem %s432_s22, 2048  ;;  %p434_p9 = scmp.lt.s32.totalorder %s612_s29, %s432_s22 }
  0x25   : > { %p429_p5 = pnand %p427_p2, %p413_p3  ;;  %p435_p4 = scmp.lt.s32.totalorder %s433_s23, %s426_s16 }
  0x27   : > { %p430_p11 = pneg %p429_p5  ;;  %p436_p7 = por %p435_p4, %p434_p9 }
  0x29   : > { %p437_p10 = pnand %p436_p7, %p430_p11 }
  0x2b   : > { %440 = shalt.err (!%p437_p10)
}
  0x2c   : > { %s526_s24 = smov 128   ;;  %s527_s25 = smov 8  }
  0x2d   : > { %352 = dma.hbm_to_vmem [thread:$0]  (!%p616_p0), %s610_s27, 1024, %s612_s29, %s621_s2, %s526_s24, %s526_s24, %s527_s25  }
  0x2e   : > { %p124_p12 = scmp.lt.s32.totalorder %s523_s11, 3  ;;  %p743_p1 = scmp.ge.s32.totalorder %s523_s11, 1 }
  0x30   : > { %p125_p3 = pnand %p743_p1, %p124_p12 }
  0x31   : > { %s653_s26 = sand.u32 (!%p125_p3), 1, %s507_s7  }
  0x32   : > { %128 = sbr.rel (%p125_p3) target bundleno = 85 (0x55), region = 24  ;;  %s330_s28 = sshll.u32 (!%p125_p3), %s653_s26, 6 }
  0x33   : > { %s131_s3 = scalar_lea.sflag (!%p125_p3), [#allocation3], %s653_s26  ;;  %s134_s4 = scalar_lea.vmem (!%p125_p3), [#allocation2], %s330_s28 }
  0x39   : > { %494 = dma.done.wait (%p588_p8), %s131_s3, 1024  }
  0x3a   : > { %496 = vsyncadd (%p588_p8), %s131_s3, 4294966272  ;;  %s331_s27 = sshll.u32 %s653_s26, 4  ;;  %v155_v0 = vlaneseq  ;;  %s344_s2 = sshll.u32 %s515_s9, 8  ;;  %v199_v9 = vld [vmem:[%s134_s4] sm:$0xff]  ;;  %v332_v10 = vld [vmem:[%s134_s4 + $0x10] sm:$0xff]  ;;  %vm216_vm2 = vcmask 130048  }
  0x3b   : > { %s152_s29 = scalar_lea.vmem [#allocation5], %s331_s27  ;;  %v334_v11 = vld [vmem:[%s134_s4 + $0x20] sm:$0xff]  ;;  %v336_v13 = vld [vmem:[%s134_s4 + $0x30] sm:$0xff]  ;;  %v200_v14 = vld [vmem:[%s134_s4 + $0x8] sm:$0xff]  ;;  %s682_s5 = scalar_lea.hbm %s736_s1, %s344_s2 }
  0x3c   : > { %v156_v1 = vshrl.u32 %v155_v0, 7  ;;  %v185_v2 = vand.u32 127, %v155_v0  ;;  %s235_s30 = sshll.u32 %s152_s29, 4  ;;  %v333_v15 = vld [vmem:[%s134_s4 + $0x18] sm:$0xff]  ;;  %v335_v18 = vld [vmem:[%s134_s4 + $0x28] sm:$0xff]  ;;  %s220_s12 = scalar_lea.sflag [#allocation4], %s653_s26  ;;  %s675_s30 = int_to_ptr.vmem [resolvable:$true] %s235_s30 }
  0x3d   : > { %v337_v19 = vld [vmem:[%s134_s4 + $0x38] sm:$0xff]  ;;  %s441_s13 = scalar_lea.vmem %s675_s30, 256  ;;  %p748_p9 = scmp.ne.s32.totalorder %s740_s19, 0 }
  0x3e   : > { %v162_v3 = vand.u32 1, %v156_v1  ;;  %v190_v4 = vand.u32 1, %v185_v2  ;;  %v157_v5 = vadd.s32 8, %v156_v1  ;;  %p442_p8 = scmp.ne.s32.totalorder %s675_s30, %s441_s13  ;;  %s528_s15 = smov [#allocation5]  }
  0x3f   : > { %s445_s16 = sshll.u32 %s528_s15, 4  ;;  %s446_s16 = int_to_ptr.vmem [resolvable:$false] %s445_s16 }
  0x40   : > { %vm662_vm0 = vcmp.eq.s32.totalorder %v190_v4, 0  ;;  %v169_v7 = vand.u32 1, %v157_v5  ;;  %vm667_vm1 = vcmp.eq.s32.totalorder %v162_v3, 0  ;;  %p443_p11 = pnand %p442_p8, %p748_p9  ;;  %s447_s17 = scalar_lea.vmem %s446_s16, 512 }
  0x41   : > { %v204_v12 = vsel %vm662_vm0, %v199_v9, %v332_v10  ;;  %v212_v16 = vsel %vm662_vm0, %v334_v11, %v336_v13  ;;  %v205_v17 = vsel %vm662_vm0, %v200_v14, %v333_v15  ;;  %v213_v21 = vsel %vm662_vm0, %v335_v18, %v337_v19  ;;  %p448_p6 = scmp.lt.s32.totalorder %s675_s30, %s446_s16  ;;  %p449_p13 = scmp.lt.s32.totalorder %s447_s17, %s441_s13 }
  0x42   : > { %vm183_vm3 = vcmp.eq.s32.totalorder %v169_v7, 0  ;;  %v214_v20 = vsel %vm667_vm1, %v204_v12, %v212_v16  ;;  %p444_p0 = pneg %p443_p11 }
  0x43   : > { %217 = vst.msk [vmem:[%s152_s29] sm:$0xff] %vm216_vm2, %v214_v20  ;;  %v215_v22 = vsel %vm183_vm3, %v205_v17, %v213_v21  ;;  %p450_p2 = por %p449_p13, %p448_p6 }
  0x44   : > { %218 = vst.msk [vmem:[%s152_s29 + $0x8] sm:$0xff] %vm216_vm2, %v215_v22 }
  0x45   : > { %p451_p5 = pnand %p450_p2, %p444_p0 }
  0x47   : > { %454 = shalt.err (!%p451_p5)
}
  0x48   : > { %s455_s22 = scalar_lea.hbm %s682_s5, 256  ;;  %s459_s25 = scalar_lea.hbm %s736_s1, 512 }
  0x49   : > { %p456_p4 = scmp.ne.s32.totalorder %s682_s5, %s455_s22  ;;  %p460_p12 = scmp.lt.u32.totalorder %s682_s5, %s736_s1 }
  0x4a   : > { %p461_p1 = scmp.lt.u32.totalorder %s459_s25, %s455_s22  ;;  %p463_p8 = scmp.lt.u32.totalorder %s455_s22, %s682_s5 }
  0x4b   : > { %p457_p7 = pnand %p456_p4, %p748_p9 }
  0x4c   : > { %p462_p3 = por %p461_p1, %p460_p12 }
  0x4d   : > { %p458_p10 = pneg %p457_p7 }
  0x4e   : > { %p464_p11 = por %p463_p8, %p462_p3 }
  0x50   : > { %p465_p0 = pnand %p464_p11, %p458_p10 }
  0x52   : > { %468 = shalt.err (!%p465_p0)
}
  0x53   : > { %s529_s4 = smov 128   ;;  %s530_s27 = smov 8  }
  0x54   : > { %347 = dma.vmem_to_hbm [thread:$0]  (%p748_p9), %s675_s30, 256, %s682_s5, %s220_s12, %s529_s4, %s529_s4, %s530_s27  }
  0x55 PF: > { %s250_s29 = sand.u32 1, %s503_s6   ;;  %p749_p6 = scmp.ne.s32.totalorder %s741_s21, 0 }
  0x56   : > { %p750_p13 = scmp.ge.s32.totalorder %s523_s11, 2  ;;  %s251_s2 = scalar_lea.sflag [#allocation4], %s250_s29 }
  0x58   : > { %p354_p2 = pnand %p750_p13, %p749_p6 }
  0x5a   : > { %498 = dma.done.wait (!%p354_p2), %s251_s2, 256  }
  0x5b   : > { %500 = vsyncadd (!%p354_p2), %s251_s2, 4294967040  ;;  %s17_s11 = sadd.s32 1, %s523_s11   ;;  %s751_s6 = smov %s507_s7 }
  0x5c   : > { %p14_p5 = scmp.ge.s32.totalorder %s17_s11, 4   ;;  %s752_s7 = smov %s511_s8 }
  0x5d   : > { %s753_s8 = smov %s597_s20  ;;  %s754_s9 = smov %s519_s10 }
  0x5e   : > { %s755_s10 = smov %s757_s14  ;;  %16 = sbr.rel (!%p14_p5) target bundleno = 6 (0x6), region = 72 }
  0x65   :  { %256 = vsyncpa [#allocation3], 1 }
  0x66   :  { %258 = vsyncpa [#allocation3 + $0x1], 1 }
  0x67   :  { %259 = vsyncpa [#allocation4], 1 }
  0x68   :  { %261 = vsyncpa [#allocation4 + $0x1], 1 }

</bundles_post_ra>
